<compile_context>
chip_gen: v7x
topology: tpu7x:2x2x1
jax: 0.10.0
libtpu: 0.0.40
codegen_flags: <defaults>
</compile_context>

<pallas_src>
import functools

import jax
import jax.numpy as jnp
from jax.experimental import pallas as pl
from jax.experimental.pallas import tpu as pltpu

EPS = 1e-5


def conv_block_kernel(x_ref, w_ref, bn_ref, o_ref, *, H, W, Cin, Cout):
    NH = x_ref.shape[0]
    K1 = W * Cin          # contraction width per tap, conv1
    K2 = W * Cout         # contraction width per tap, conv2 (= output lane width)

    # Boundary row masks, hoisted once and reused by both convs / both shifted
    # taps (review: do not rebuild iota masks per tap).  (NH, 1) column masks
    # broadcast over lanes inside jnp.where.
    h_idx = jax.lax.broadcasted_iota(jnp.int32, (NH, 1), 0) % H
    not_top = h_idx != 0          # rows valid for the dh = -1 tap
    not_bot = h_idx != H - 1      # rows valid for the dh = +1 tap

    def conv3x3(t, row0, K):
        """3x3 conv (stride 1, pad 1) as 3 accumulated MXU matmuls.

        t: (NH, K) lane-dense activations; weight rows [row0, row0 + 3K) of
        w_ref hold the dh = -1, 0, +1 block-tridiagonal-over-W matrices.
        """
        # H-shifted taps via XLU sublane rotation; wrapped rows are zeroed by
        # the hoisted masks (this is the padding=1 along H).
        up = jnp.where(not_top, pltpu.roll(t, shift=1, axis=0), 0.0)        # x[h-1]
        dn = jnp.where(not_bot, pltpu.roll(t, shift=NH - 1, axis=0), 0.0)   # x[h+1]
        acc = jnp.dot(up, w_ref[row0:row0 + K, :],
                      preferred_element_type=jnp.float32)
        acc = acc + jnp.dot(t, w_ref[row0 + K:row0 + 2 * K, :],
                            preferred_element_type=jnp.float32)
        acc = acc + jnp.dot(dn, w_ref[row0 + 2 * K:row0 + 3 * K, :],
                            preferred_element_type=jnp.float32)
        return acc

    def group_avg(v):
        """(1, W*Cout) per-(w, c) stats -> per-channel average on every lane.

        log2(W) circular roll-add tree over the W lane groups (stride Cout);
        the result is already broadcast to all (w, c) lanes, no concat needed.
        """
        s = v
        off = Cout
        while off < K2:
            s = s + pltpu.roll(s, shift=off, axis=1)
            off *= 2
        return s * (1.0 / W)

    def bn_relu(a, gamma, beta):
        """Training-mode BatchNorm2d + ReLU in the (NH, W*Cout) layout."""
        mean = group_avg(jnp.mean(a, axis=0, keepdims=True))
        d = a - mean                                   # centered -> stable variance
        var = group_avg(jnp.mean(d * d, axis=0, keepdims=True))
        scale = gamma * jax.lax.rsqrt(var + EPS)       # fused affine (one FMA/elem)
        return jnp.maximum(d * scale + beta, 0.0)

    x = x_ref[...]
    y1 = bn_relu(conv3x3(x, 0, K1), bn_ref[0:1, :], bn_ref[1:2, :])
    y2 = bn_relu(conv3x3(y1, 3 * K1, K2), bn_ref[2:3, :], bn_ref[3:4, :])
    o_ref[...] = y2                                    # unmasked lane-dense store


def _tridiag_conv_matrix(w, W):
    """(3, 3, Cin, Cout) HWIO conv weight -> (3*W*Cin, W*Cout) packed weight.

    For tap dh (= kh - 1), rows [dh_idx*W*Cin, (dh_idx+1)*W*Cin) hold a
    block-tridiagonal-over-W matrix M with
      M[w*Cin + ci, x*Cout + co] = w[kh, (w - x) + 1, ci, co]  if |w - x| <= 1
                                   0                           otherwise,
    which folds the dw shifts and the W-edge zero padding into the weight.
    """
    Cin, Cout = w.shape[2], w.shape[3]
    idx = jnp.arange(W)
    diff = idx[:, None] - idx[None, :]                       # w_src - w_out
    band = jnp.abs(diff) <= 1
    kw = jnp.clip(diff + 1, 0, 2)
    sel = (band[:, :, None]
           & (kw[:, :, None] == jnp.arange(3)[None, None, :])).astype(w.dtype)
    m = jnp.einsum('hkio,wxk->hwixo', w, sel)                # (3, W, Cin, W, Cout)
    return m.reshape(3 * W * Cin, W * Cout)


def pack_params(params, W):
    """One-time parameter packing (hoisted out of the per-call path).

    Returns:
      w_packed:  (3*W*Cin + 3*W*Cout, W*Cout) both convs' tridiagonal weights.
      bn_packed: (4, W*Cout) rows = [gamma1, beta1, gamma2, beta2] tiled to
                 the (w, c) lane layout.
    Conv biases are dropped: cancelled exactly by training-mode BN mean
    subtraction.
    """
    w1, b1, g1, be1, w2, b2, g2, be2 = params
    del b1, b2
    w_packed = jnp.concatenate(
        [_tridiag_conv_matrix(w1, W), _tridiag_conv_matrix(w2, W)], axis=0)
    bn_packed = jnp.stack(
        [jnp.tile(g1, W), jnp.tile(be1, W), jnp.tile(g2, W), jnp.tile(be2, W)],
        axis=0)
    return w_packed, bn_packed


@jax.jit
def conv_block(x_nchw, w_packed, bn_packed):
    """Pallas ConvBlock. x_nchw: (N, Cin, H, W) f32 -> (N, Cout, H, W) f32."""
    N, Cin, H, W = x_nchw.shape
    Cout = bn_packed.shape[-1] // W
    assert W & (W - 1) == 0, "roll-tree BN reduction assumes W is a power of 2"

    # Lane-dense presentation: rows = (n, h), lanes = (w, c).
    # (These transposes stay as XLA ops around the kernel; with a future NHWC
    # API boundary or allow_input_fusion they could be removed entirely.)
    x2d = jnp.transpose(x_nchw, (0, 2, 3, 1)).reshape(N * H, W * Cin)

    kernel = functools.partial(conv_block_kernel, H=H, W=W, Cin=Cin, Cout=Cout)
    vmem = pl.BlockSpec(memory_space=pltpu.MemorySpace.VMEM)
    flops = int(2 * N * H * 3 * (W * Cin + W * Cout) * W * Cout)
    bytes_accessed = int(4 * (x2d.size + w_packed.size + bn_packed.size
                              + N * H * W * Cout))
    out2d = pl.pallas_call(
        kernel,
        out_shape=jax.ShapeDtypeStruct((N * H, W * Cout), jnp.float32),
        in_specs=[vmem, vmem, vmem],
        out_specs=vmem,
        cost_estimate=pl.CostEstimate(flops=flops,
                                      transcendentals=int(2 * W * Cout),
                                      bytes_accessed=bytes_accessed),
    )(x2d, w_packed, bn_packed)

    out = out2d.reshape(N, H, W, Cout)
    return jnp.transpose(out, (0, 3, 1, 2))                  # back to NCHW


def reference(x_nchw, params):
    """Pure-JAX reference of the PyTorch forward (training-mode BN)."""
    w1, b1, g1, be1, w2, b2, g2, be2 = params
    x = jnp.transpose(x_nchw, (0, 2, 3, 1))

    def conv(x, w, b):
        y = jax.lax.conv_general_dilated(
            x, w, window_strides=(1, 1), padding="SAME",
            dimension_numbers=("NHWC", "HWIO", "NHWC"))
        return y + b

    def bn_relu(x, g, be):
        m = jnp.mean(x, axis=(0, 1, 2))
        v = jnp.var(x, axis=(0, 1, 2))
        return jnp.maximum((x - m) * jax.lax.rsqrt(v + EPS) * g + be, 0.0)

    y = bn_relu(conv(x, w1, b1), g1, be1)
    y = bn_relu(conv(y, w2, b2), g2, be2)
    return jnp.transpose(y, (0, 3, 1, 2))


if __name__ == "__main__":
    key = jax.random.PRNGKey(0)
    N, in_ch, out_ch, H, W = 2, 4, 8, 16, 16

    ks = jax.random.split(key, 9)
    x = jax.random.normal(ks[0], (N, in_ch, H, W), jnp.float32)

    # Deterministic synthetic parameters (shapes match nn.Conv2d / nn.BatchNorm2d).
    w1 = jax.random.normal(ks[1], (3, 3, in_ch, out_ch), jnp.float32) * 0.2
    b1 = jax.random.normal(ks[2], (out_ch,), jnp.float32) * 0.1
    g1 = 1.0 + 0.1 * jax.random.normal(ks[3], (out_ch,), jnp.float32)
    be1 = 0.1 * jax.random.normal(ks[4], (out_ch,), jnp.float32)
    w2 = jax.random.normal(ks[5], (3, 3, out_ch, out_ch), jnp.float32) * 0.2
    b2 = jax.random.normal(ks[6], (out_ch,), jnp.float32) * 0.1
    g2 = 1.0 + 0.1 * jax.random.normal(ks[7], (out_ch,), jnp.float32)
    be2 = 0.1 * jax.random.normal(ks[8], (out_ch,), jnp.float32)
    params = (w1, b1, g1, be1, w2, b2, g2, be2)

    # One-time packing of conv weights / BN affines (hoisted out of the call).
    w_packed, bn_packed = pack_params(params, W)

    out = jax.block_until_ready(conv_block(x, w_packed, bn_packed))
    ref = jax.block_until_ready(reference(x, params))

    assert out.shape == (N, out_ch, H, W), out.shape
    assert jnp.allclose(out, ref, rtol=1e-4, atol=1e-4), \
        float(jnp.max(jnp.abs(out - ref)))
    print("KERNEL_OK")
</pallas_src>

<mosaic_0001>
module attributes {stable_mosaic.version = 11 : i64} {
  func.func @conv_block_kernel(%arg0: memref<32x64xf32, #tpu.memory_space<vmem>>, %arg1: memref<576x128xf32, #tpu.memory_space<vmem>>, %arg2: memref<4x128xf32, #tpu.memory_space<vmem>>, %arg3: memref<32x128xf32, #tpu.memory_space<vmem>>) attributes {dimension_semantics = [], scalar_prefetch = 0 : i64, scratch_operands = 0 : i64, tpu.core_type = #tpu.core_type<tc>} {
    %0 = tpu.iota {dimensions = array<i32: 0>} : vector<32x1xi32>
    %c16_i32 = arith.constant 16 : i32
    %c0_i32 = arith.constant 0 : i32
    %1 = arith.cmpi eq, %c16_i32, %c0_i32 : i32
    %c1_i32 = arith.constant 1 : i32
    %2 = arith.select %1, %c1_i32, %c16_i32 : i32
    %3 = vector.broadcast %2 : i32 to vector<32x1xi32>
    %4 = arith.remsi %0, %3 : vector<32x1xi32>
    %c0_i32_0 = arith.constant 0 : i32
    %5 = vector.broadcast %c0_i32_0 : i32 to vector<32x1xi32>
    %6 = arith.cmpi ne, %4, %5 : vector<32x1xi32>
    %c0_i32_1 = arith.constant 0 : i32
    %7 = vector.broadcast %c0_i32_1 : i32 to vector<32x1xi32>
    %8 = arith.cmpi slt, %4, %7 : vector<32x1xi32>
    %c0_i32_2 = arith.constant 0 : i32
    %9 = arith.cmpi slt, %2, %c0_i32_2 : i32
    %10 = vector.broadcast %9 : i1 to vector<32x1xi1>
    %11 = vector.broadcast %10 : vector<32x1xi1> to vector<32x1xi1>
    %12 = arith.xori %8, %11 : vector<32x1xi1>
    %13 = arith.andi %12, %6 : vector<32x1xi1>
    %14 = vector.broadcast %2 : i32 to vector<32x1xi32>
    %15 = arith.addi %4, %14 : vector<32x1xi32>
    %16 = arith.select %13, %15, %4 : vector<32x1xi1>, vector<32x1xi32>
    %c0_i32_3 = arith.constant 0 : i32
    %17 = vector.broadcast %c0_i32_3 : i32 to vector<32x1xi32>
    %18 = arith.cmpi ne, %16, %17 : vector<32x1xi32>
    %c15_i32 = arith.constant 15 : i32
    %19 = vector.broadcast %c15_i32 : i32 to vector<32x1xi32>
    %20 = arith.cmpi ne, %16, %19 : vector<32x1xi32>
    %c0 = arith.constant 0 : index
    %c0_4 = arith.constant 0 : index
    %21 = vector.load %arg0[%c0, %c0_4] : memref<32x64xf32, #tpu.memory_space<vmem>>, vector<32x64xf32>
    %c1_i32_5 = arith.constant 1 : i32
    %22 = tpu.dynamic_rotate %21 by %c1_i32_5 dim 0 : vector<32x64xf32>, i32 -> vector<32x64xf32>
    %cst = arith.constant 0.000000e+00 : f32
    %23 = vector.shape_cast %18 : vector<32x1xi1> to vector<32x1xi1>
    %24 = vector.broadcast %23 : vector<32x1xi1> to vector<32x64xi1>
    %25 = vector.broadcast %cst : f32 to vector<32x64xf32>
    %26 = arith.select %24, %22, %25 : vector<32x64xi1>, vector<32x64xf32>
    %c31_i32 = arith.constant 31 : i32
    %27 = tpu.dynamic_rotate %21 by %c31_i32 dim 0 : vector<32x64xf32>, i32 -> vector<32x64xf32>
    %cst_6 = arith.constant 0.000000e+00 : f32
    %28 = vector.shape_cast %20 : vector<32x1xi1> to vector<32x1xi1>
    %29 = vector.broadcast %28 : vector<32x1xi1> to vector<32x64xi1>
    %30 = vector.broadcast %cst_6 : f32 to vector<32x64xf32>
    %31 = arith.select %29, %27, %30 : vector<32x64xi1>, vector<32x64xf32>
    %c0_7 = arith.constant 0 : index
    %c0_8 = arith.constant 0 : index
    %32 = vector.load %arg1[%c0_7, %c0_8] : memref<576x128xf32, #tpu.memory_space<vmem>>, vector<64x128xf32>
    %cst_9 = arith.constant dense<0.000000e+00> : vector<32x128xf32>
    %33 = tpu.matmul %26, %32, %cst_9 {dimension_numbers = #tpu.dot_dimension_numbers<[1], [0], [0], [1], [0, 0, 1, 1], [], []>} : vector<32x64xf32>, vector<64x128xf32>, vector<32x128xf32> -> vector<32x128xf32>
    %c64 = arith.constant 64 : index
    %c0_10 = arith.constant 0 : index
    %34 = vector.load %arg1[%c64, %c0_10] : memref<576x128xf32, #tpu.memory_space<vmem>>, vector<64x128xf32>
    %cst_11 = arith.constant dense<0.000000e+00> : vector<32x128xf32>
    %35 = tpu.matmul %21, %34, %cst_11 {dimension_numbers = #tpu.dot_dimension_numbers<[1], [0], [0], [1], [0, 0, 1, 1], [], []>} : vector<32x64xf32>, vector<64x128xf32>, vector<32x128xf32> -> vector<32x128xf32>
    %36 = arith.addf %33, %35 : vector<32x128xf32>
    %c128 = arith.constant 128 : index
    %c0_12 = arith.constant 0 : index
    %37 = vector.load %arg1[%c128, %c0_12] : memref<576x128xf32, #tpu.memory_space<vmem>>, vector<64x128xf32>
    %cst_13 = arith.constant dense<0.000000e+00> : vector<32x128xf32>
    %38 = tpu.matmul %31, %37, %cst_13 {dimension_numbers = #tpu.dot_dimension_numbers<[1], [0], [0], [1], [0, 0, 1, 1], [], []>} : vector<32x64xf32>, vector<64x128xf32>, vector<32x128xf32> -> vector<32x128xf32>
    %39 = arith.addf %36, %38 : vector<32x128xf32>
    %c0_14 = arith.constant 0 : index
    %c0_15 = arith.constant 0 : index
    %40 = vector.load %arg2[%c0_14, %c0_15] : memref<4x128xf32, #tpu.memory_space<vmem>>, vector<1x128xf32>
    %c1 = arith.constant 1 : index
    %c0_16 = arith.constant 0 : index
    %41 = vector.load %arg2[%c1, %c0_16] : memref<4x128xf32, #tpu.memory_space<vmem>>, vector<1x128xf32>
    %cst_17 = arith.constant dense<0.000000e+00> : vector<128xf32>
    %42 = vector.multi_reduction <add>, %39, %cst_17 [0] : vector<32x128xf32> to vector<128xf32>
    %43 = vector.shape_cast %42 : vector<128xf32> to vector<1x128xf32>
    %cst_18 = arith.constant 3.200000e+01 : f32
    %44 = vector.broadcast %cst_18 : f32 to vector<1x128xf32>
    %45 = arith.divf %43, %44 : vector<1x128xf32>
    %c8_i32 = arith.constant 8 : i32
    %46 = tpu.dynamic_rotate %45 by %c8_i32 dim 1 : vector<1x128xf32>, i32 -> vector<1x128xf32>
    %47 = arith.addf %45, %46 : vector<1x128xf32>
    %c16_i32_19 = arith.constant 16 : i32
    %48 = tpu.dynamic_rotate %47 by %c16_i32_19 dim 1 : vector<1x128xf32>, i32 -> vector<1x128xf32>
    %49 = arith.addf %47, %48 : vector<1x128xf32>
    %c32_i32 = arith.constant 32 : i32
    %50 = tpu.dynamic_rotate %49 by %c32_i32 dim 1 : vector<1x128xf32>, i32 -> vector<1x128xf32>
    %51 = arith.addf %49, %50 : vector<1x128xf32>
    %c64_i32 = arith.constant 64 : i32
    %52 = tpu.dynamic_rotate %51 by %c64_i32 dim 1 : vector<1x128xf32>, i32 -> vector<1x128xf32>
    %53 = arith.addf %51, %52 : vector<1x128xf32>
    %cst_20 = arith.constant 6.250000e-02 : f32
    %54 = vector.broadcast %cst_20 : f32 to vector<1x128xf32>
    %55 = arith.mulf %53, %54 : vector<1x128xf32>
    %56 = vector.broadcast %55 : vector<1x128xf32> to vector<32x128xf32>
    %57 = arith.subf %39, %56 : vector<32x128xf32>
    %58 = arith.mulf %57, %57 : vector<32x128xf32>
    %cst_21 = arith.constant dense<0.000000e+00> : vector<128xf32>
    %59 = vector.multi_reduction <add>, %58, %cst_21 [0] : vector<32x128xf32> to vector<128xf32>
    %60 = vector.shape_cast %59 : vector<128xf32> to vector<1x128xf32>
    %cst_22 = arith.constant 3.200000e+01 : f32
    %61 = vector.broadcast %cst_22 : f32 to vector<1x128xf32>
    %62 = arith.divf %60, %61 : vector<1x128xf32>
    %c8_i32_23 = arith.constant 8 : i32
    %63 = tpu.dynamic_rotate %62 by %c8_i32_23 dim 1 : vector<1x128xf32>, i32 -> vector<1x128xf32>
    %64 = arith.addf %62, %63 : vector<1x128xf32>
    %c16_i32_24 = arith.constant 16 : i32
    %65 = tpu.dynamic_rotate %64 by %c16_i32_24 dim 1 : vector<1x128xf32>, i32 -> vector<1x128xf32>
    %66 = arith.addf %64, %65 : vector<1x128xf32>
    %c32_i32_25 = arith.constant 32 : i32
    %67 = tpu.dynamic_rotate %66 by %c32_i32_25 dim 1 : vector<1x128xf32>, i32 -> vector<1x128xf32>
    %68 = arith.addf %66, %67 : vector<1x128xf32>
    %c64_i32_26 = arith.constant 64 : i32
    %69 = tpu.dynamic_rotate %68 by %c64_i32_26 dim 1 : vector<1x128xf32>, i32 -> vector<1x128xf32>
    %70 = arith.addf %68, %69 : vector<1x128xf32>
    %cst_27 = arith.constant 6.250000e-02 : f32
    %71 = vector.broadcast %cst_27 : f32 to vector<1x128xf32>
    %72 = arith.mulf %70, %71 : vector<1x128xf32>
    %cst_28 = arith.constant 9.99999974E-6 : f32
    %73 = vector.broadcast %cst_28 : f32 to vector<1x128xf32>
    %74 = arith.addf %72, %73 : vector<1x128xf32>
    %75 = math.rsqrt %74 : vector<1x128xf32>
    %76 = arith.mulf %40, %75 : vector<1x128xf32>
    %77 = vector.broadcast %76 : vector<1x128xf32> to vector<32x128xf32>
    %78 = arith.mulf %57, %77 : vector<32x128xf32>
    %79 = vector.broadcast %41 : vector<1x128xf32> to vector<32x128xf32>
    %80 = arith.addf %78, %79 : vector<32x128xf32>
    %cst_29 = arith.constant 0.000000e+00 : f32
    %81 = vector.broadcast %cst_29 : f32 to vector<32x128xf32>
    %82 = arith.maximumf %80, %81 : vector<32x128xf32>
    %c1_i32_30 = arith.constant 1 : i32
    %83 = tpu.dynamic_rotate %82 by %c1_i32_30 dim 0 : vector<32x128xf32>, i32 -> vector<32x128xf32>
    %cst_31 = arith.constant 0.000000e+00 : f32
    %84 = vector.shape_cast %18 : vector<32x1xi1> to vector<32x1xi1>
    %85 = vector.broadcast %84 : vector<32x1xi1> to vector<32x128xi1>
    %86 = vector.broadcast %cst_31 : f32 to vector<32x128xf32>
    %87 = arith.select %85, %83, %86 : vector<32x128xi1>, vector<32x128xf32>
    %c31_i32_32 = arith.constant 31 : i32
    %88 = tpu.dynamic_rotate %82 by %c31_i32_32 dim 0 : vector<32x128xf32>, i32 -> vector<32x128xf32>
    %cst_33 = arith.constant 0.000000e+00 : f32
    %89 = vector.shape_cast %20 : vector<32x1xi1> to vector<32x1xi1>
    %90 = vector.broadcast %89 : vector<32x1xi1> to vector<32x128xi1>
    %91 = vector.broadcast %cst_33 : f32 to vector<32x128xf32>
    %92 = arith.select %90, %88, %91 : vector<32x128xi1>, vector<32x128xf32>
    %c192 = arith.constant 192 : index
    %c0_34 = arith.constant 0 : index
    %93 = vector.load %arg1[%c192, %c0_34] : memref<576x128xf32, #tpu.memory_space<vmem>>, vector<128x128xf32>
    %cst_35 = arith.constant dense<0.000000e+00> : vector<32x128xf32>
    %94 = tpu.matmul %87, %93, %cst_35 {dimension_numbers = #tpu.dot_dimension_numbers<[1], [0], [0], [1], [0, 0, 1, 1], [], []>} : vector<32x128xf32>, vector<128x128xf32>, vector<32x128xf32> -> vector<32x128xf32>
    %c320 = arith.constant 320 : index
    %c0_36 = arith.constant 0 : index
    %95 = vector.load %arg1[%c320, %c0_36] : memref<576x128xf32, #tpu.memory_space<vmem>>, vector<128x128xf32>
    %cst_37 = arith.constant dense<0.000000e+00> : vector<32x128xf32>
    %96 = tpu.matmul %82, %95, %cst_37 {dimension_numbers = #tpu.dot_dimension_numbers<[1], [0], [0], [1], [0, 0, 1, 1], [], []>} : vector<32x128xf32>, vector<128x128xf32>, vector<32x128xf32> -> vector<32x128xf32>
    %97 = arith.addf %94, %96 : vector<32x128xf32>
    %c448 = arith.constant 448 : index
    %c0_38 = arith.constant 0 : index
    %98 = vector.load %arg1[%c448, %c0_38] : memref<576x128xf32, #tpu.memory_space<vmem>>, vector<128x128xf32>
    %cst_39 = arith.constant dense<0.000000e+00> : vector<32x128xf32>
    %99 = tpu.matmul %92, %98, %cst_39 {dimension_numbers = #tpu.dot_dimension_numbers<[1], [0], [0], [1], [0, 0, 1, 1], [], []>} : vector<32x128xf32>, vector<128x128xf32>, vector<32x128xf32> -> vector<32x128xf32>
    %100 = arith.addf %97, %99 : vector<32x128xf32>
    %c2 = arith.constant 2 : index
    %c0_40 = arith.constant 0 : index
    %101 = vector.load %arg2[%c2, %c0_40] : memref<4x128xf32, #tpu.memory_space<vmem>>, vector<1x128xf32>
    %c3 = arith.constant 3 : index
    %c0_41 = arith.constant 0 : index
    %102 = vector.load %arg2[%c3, %c0_41] : memref<4x128xf32, #tpu.memory_space<vmem>>, vector<1x128xf32>
    %cst_42 = arith.constant dense<0.000000e+00> : vector<128xf32>
    %103 = vector.multi_reduction <add>, %100, %cst_42 [0] : vector<32x128xf32> to vector<128xf32>
    %104 = vector.shape_cast %103 : vector<128xf32> to vector<1x128xf32>
    %cst_43 = arith.constant 3.200000e+01 : f32
    %105 = vector.broadcast %cst_43 : f32 to vector<1x128xf32>
    %106 = arith.divf %104, %105 : vector<1x128xf32>
    %c8_i32_44 = arith.constant 8 : i32
    %107 = tpu.dynamic_rotate %106 by %c8_i32_44 dim 1 : vector<1x128xf32>, i32 -> vector<1x128xf32>
    %108 = arith.addf %106, %107 : vector<1x128xf32>
    %c16_i32_45 = arith.constant 16 : i32
    %109 = tpu.dynamic_rotate %108 by %c16_i32_45 dim 1 : vector<1x128xf32>, i32 -> vector<1x128xf32>
    %110 = arith.addf %108, %109 : vector<1x128xf32>
    %c32_i32_46 = arith.constant 32 : i32
    %111 = tpu.dynamic_rotate %110 by %c32_i32_46 dim 1 : vector<1x128xf32>, i32 -> vector<1x128xf32>
    %112 = arith.addf %110, %111 : vector<1x128xf32>
    %c64_i32_47 = arith.constant 64 : i32
    %113 = tpu.dynamic_rotate %112 by %c64_i32_47 dim 1 : vector<1x128xf32>, i32 -> vector<1x128xf32>
    %114 = arith.addf %112, %113 : vector<1x128xf32>
    %cst_48 = arith.constant 6.250000e-02 : f32
    %115 = vector.broadcast %cst_48 : f32 to vector<1x128xf32>
    %116 = arith.mulf %114, %115 : vector<1x128xf32>
    %117 = vector.broadcast %116 : vector<1x128xf32> to vector<32x128xf32>
    %118 = arith.subf %100, %117 : vector<32x128xf32>
    %119 = arith.mulf %118, %118 : vector<32x128xf32>
    %cst_49 = arith.constant dense<0.000000e+00> : vector<128xf32>
    %120 = vector.multi_reduction <add>, %119, %cst_49 [0] : vector<32x128xf32> to vector<128xf32>
    %121 = vector.shape_cast %120 : vector<128xf32> to vector<1x128xf32>
    %cst_50 = arith.constant 3.200000e+01 : f32
    %122 = vector.broadcast %cst_50 : f32 to vector<1x128xf32>
    %123 = arith.divf %121, %122 : vector<1x128xf32>
    %c8_i32_51 = arith.constant 8 : i32
    %124 = tpu.dynamic_rotate %123 by %c8_i32_51 dim 1 : vector<1x128xf32>, i32 -> vector<1x128xf32>
    %125 = arith.addf %123, %124 : vector<1x128xf32>
    %c16_i32_52 = arith.constant 16 : i32
    %126 = tpu.dynamic_rotate %125 by %c16_i32_52 dim 1 : vector<1x128xf32>, i32 -> vector<1x128xf32>
    %127 = arith.addf %125, %126 : vector<1x128xf32>
    %c32_i32_53 = arith.constant 32 : i32
    %128 = tpu.dynamic_rotate %127 by %c32_i32_53 dim 1 : vector<1x128xf32>, i32 -> vector<1x128xf32>
    %129 = arith.addf %127, %128 : vector<1x128xf32>
    %c64_i32_54 = arith.constant 64 : i32
    %130 = tpu.dynamic_rotate %129 by %c64_i32_54 dim 1 : vector<1x128xf32>, i32 -> vector<1x128xf32>
    %131 = arith.addf %129, %130 : vector<1x128xf32>
    %cst_55 = arith.constant 6.250000e-02 : f32
    %132 = vector.broadcast %cst_55 : f32 to vector<1x128xf32>
    %133 = arith.mulf %131, %132 : vector<1x128xf32>
    %cst_56 = arith.constant 9.99999974E-6 : f32
    %134 = vector.broadcast %cst_56 : f32 to vector<1x128xf32>
    %135 = arith.addf %133, %134 : vector<1x128xf32>
    %136 = math.rsqrt %135 : vector<1x128xf32>
    %137 = arith.mulf %101, %136 : vector<1x128xf32>
    %138 = vector.broadcast %137 : vector<1x128xf32> to vector<32x128xf32>
    %139 = arith.mulf %118, %138 : vector<32x128xf32>
    %140 = vector.broadcast %102 : vector<1x128xf32> to vector<32x128xf32>
    %141 = arith.addf %139, %140 : vector<32x128xf32>
    %cst_57 = arith.constant 0.000000e+00 : f32
    %142 = vector.broadcast %cst_57 : f32 to vector<32x128xf32>
    %143 = arith.maximumf %141, %142 : vector<32x128xf32>
    %c0_58 = arith.constant 0 : index
    %c0_59 = arith.constant 0 : index
    %144 = vector.load %arg3[%c0_58, %c0_59] : memref<32x128xf32, #tpu.memory_space<vmem>>, vector<32x128xf32>
    tpu.vector_store %arg3[%c0_58, %c0_59], %143 {strides = array<i32>} : memref<32x128xf32, #tpu.memory_space<vmem>>, vector<32x128xf32>,
    return
  }
}

</mosaic_0001>

<bundles_post_ra>
// kernel: conv_block.1
= control target key start
LH: loop header
LB: loop body
LE: loop exit
PB: predicated region body
PF: predicated region fallthrough
CT: control target
= control target key end

     0   :  { %8 = vsyncpa [#allocation3], 0  ;;  %s1450_s12 = smov [#allocation2]   ;;  %s1692_s0 = inlined_call_operand.vmem [shape: f32[32,64], index: 0, kind: input, shape index: {}]   ;;  %s1693_s1 = inlined_call_operand.hbm [shape: f32[576,128], index: 1, kind: input, shape index: {}]   ;;  %s1694_s2 = inlined_call_operand.vmem [shape: f32[4,128], index: 2, kind: input, shape index: {}]   ;;  %s1695_s3 = inlined_call_operand.vmem [shape: f32[32,128], index: 3, kind: output, shape index: {}]  }
   0x1   :  { %s16_s13 = sshll.u32 %s1450_s12, 4  ;;  %s1426_s16 = scalar_lea.hbm %s1693_s1, 9216  ;;  %s17_s13 = int_to_ptr.vmem [resolvable:$true] %s16_s13 }
   0x2   :  { %p1427_p0 = scmp.ne.s32.totalorder %s1693_s1, %s1426_s16  ;;  %p1430_p1 = scmp.lt.u32.totalorder %s1426_s16, %s1693_s1 }
   0x4   :  { %p1432_p2 = pnand %p1430_p1, %p1427_p0 }
   0x6   :  { %1435 = shalt.err (!%p1432_p2)
}
   0x7   :  { %s1436_s21 = scalar_lea.vmem %s17_s13, 9216  ;;  %p1441_p4 = scmp.lt.s32.totalorder %s17_s13, %s17_s13 }
   0x8   :  { %p1437_p3 = scmp.ne.s32.totalorder %s17_s13, %s1436_s21  ;;  %p1442_p5 = scmp.lt.s32.totalorder %s1436_s21, %s1436_s21 }
   0xa   :  { %p1443_p6 = por %p1442_p5, %p1441_p4 }
   0xc   :  { %p1444_p7 = pnand %p1443_p6, %p1437_p3 }
   0xe   :  { %1447 = shalt.err (!%p1444_p7)
}
   0xf   :  { %s1451_s22 = smov 128   ;;  %s1452_s23 = smov 8  }
  0x10   :  { %22 = dma.hbm_to_vmem [thread:$0]  %s1693_s1, 9216, %s17_s13, [#allocation3], %s1451_s22, %s1451_s22, %s1452_s23  }
  0x11   :  { %1448 = dma.done.wait [#allocation3], 9216  }
  0x12   :  { %1449 = vsyncadd [#allocation3], 4294958080  ;;  %v143_v0 = vld [vmem:[#allocation2 + $0x40] sm:$0xff]  ;;  %v144_v1 = vld [vmem:[#allocation2 + $0x48] sm:$0xff]  ;;  %vm151_vm0 = vcmask 523264   ;;  %v28_v12 = vlaneseq  ;;  %s1454_s6 = smov 32  }
  0x13   :  { %v145_v2 = vld [vmem:[#allocation2 + $0x50] sm:$0xff]  ;;  %v1256_v3 = vpack.c.bf16 %v144_v1, %v143_v0  ;;  %v146_v4 = vld [vmem:[#allocation2 + $0x58] sm:$0xff]  ;;  %v147_v6 = vld [vmem:[#allocation2 + $0x60] sm:$0xff]  ;;  %s1455_s7 = smov 64  }
  0x14   :  { %v1260_v5 = vpack.c.bf16 %v146_v4, %v145_v2  ;;  %v148_v7 = vld [vmem:[#allocation2 + $0x68] sm:$0xff]  ;;  %v1492_v8 = vld [vmem:[%s1692_s0] sm:$0xff]  ;;  %v149_v10 = vld [vmem:[#allocation2 + $0x70] sm:$0xff]  ;;  %v1496_v16 = vshrl.u32 %v28_v12, 7 }
  0x15   :  { %1257 = vmatprep.subr.bf16.mxu0 %v1256_v3  ;;  %1092 = vmatprep.mubr.msk.f32.mxu0 %vm151_vm0, %v1492_v8  ;;  %v1264_v9 = vpack.c.bf16 %v148_v7, %v147_v6  ;;  %v150_v11 = vld [vmem:[#allocation2 + $0x78] sm:$0xff]  ;;  %v135_v14 = vld [vmem:[#allocation2] sm:$0xff]  ;;  %v136_v15 = vld [vmem:[#allocation2 + $0x8] sm:$0xff]  ;;  %v93_v19 = vrot.slane %v1492_v8, 7  ;;  %v114_v48 = vrot.slane %v1492_v8, 1 }
  0x16   :  { %1259 = vmatpush3.bf16.msra.mxu0 %v1256_v3  ;;  %v1268_v13 = vpack.c.bf16 %v150_v11, %v149_v10  ;;  %v1501_v17 = vld [vmem:[%s1692_s0 + $0x18] sm:$0xff]  ;;  %v1272_v18 = vpack.c.bf16 %v136_v15, %v135_v14  ;;  %v137_v20 = vld [vmem:[#allocation2 + $0x10] sm:$0xff]  ;;  %v37_v23 = vand.u32 15, %v1496_v16  ;;  %vm97_vm1 = vcmp.lt.s32.totalorder %v1496_v16, 1  ;;  %v1510_v24 = vld [vmem:[%s1692_s0 + $0x8] sm:$0xff] }
  0x17   :  { %1261 = vmatprep.subr.bf16.mxu0 %v1260_v5  ;;  %v138_v21 = vld [vmem:[#allocation2 + $0x18] sm:$0xff]  ;;  %v96_v22 = vrot.slane %v1501_v17, 7  ;;  %v1515_v26 = vld [vmem:[%s1692_s0 + $0x10] sm:$0xff]  ;;  %v139_v27 = vld [vmem:[#allocation2 + $0x20] sm:$0xff]  ;;  %v31_v35 = vadd.s32 16, %v1496_v16  ;;  %v94_v41 = vrot.slane %v1510_v24, 7 }
  0x18   :  { %v1276_v25 = vpack.c.bf16 %v138_v21, %v137_v20  ;;  %v140_v28 = vld [vmem:[#allocation2 + $0x28] sm:$0xff]  ;;  %vm1517_vm2 = vcmp.ne.s32.totalorder %v37_v23, 0  ;;  %v141_v33 = vld [vmem:[#allocation2 + $0x30] sm:$0xff]  ;;  %v142_v34 = vld [vmem:[#allocation2 + $0x38] sm:$0xff]  ;;  %v95_v37 = vrot.slane %v1515_v26, 7  ;;  %v115_v49 = vrot.slane %v1510_v24, 1 }
  0x19   :  { %v101_v30 = vsel %vm97_vm1, %v96_v22, %v93_v19  ;;  %v1280_v31 = vpack.c.bf16 %v140_v28, %v139_v27  ;;  %v1284_v36 = vpack.c.bf16 %v142_v34, %v141_v33  ;;  %v346_v38 = vld [vmem:[#allocation2 + $0x80] sm:$0xff]  ;;  %v347_v39 = vld [vmem:[#allocation2 + $0x88] sm:$0xff]  ;;  %v51_v40 = vand.u32 15, %v31_v35  ;;  %v348_v43 = vld [vmem:[#allocation2 + $0x90] sm:$0xff]  ;;  %s1453_s0 = smov 16  }
  0x1a   :  { %1263 = vmatpush3.bf16.msra.mxu0 %v1260_v5  ;;  %v110_v32 = vsel %vm1517_vm2, %v101_v30, 0.0  ;;  %v1288_v42 = vpack.c.bf16 %v347_v39, %v346_v38  ;;  %v349_v44 = vld [vmem:[#allocation2 + $0x98] sm:$0xff]  ;;  %v99_v46 = vsel %vm97_vm1, %v94_v41, %v95_v37  ;;  %v100_v47 = vsel %vm97_vm1, %v93_v19, %v94_v41  ;;  %v350_v52 = vld [vmem:[#allocation2 + $0xa0] sm:$0xff]  ;;  %v351_v53 = vld [vmem:[#allocation2 + $0xa8] sm:$0xff] }
  0x1b   :  { %1265 = vmatprep.subr.bf16.mxu0 %v1264_v9  ;;  %vm1535_vm3 = vcmp.ne.s32.totalorder %v51_v40, 0  ;;  %v1292_v50 = vpack.c.bf16 %v349_v44, %v348_v43  ;;  %vm118_vm4 = vcmp.lt.s32.totalorder %v1496_v16, 7  ;;  %v98_v54 = vsel %vm97_vm1, %v95_v37, %v96_v22  ;;  %v352_v58 = vld [vmem:[#allocation2 + $0xb0] sm:$0xff]  ;;  %v353_v59 = vld [vmem:[#allocation2 + $0xb8] sm:$0xff] }
  0x1c   :  { %v112_v51 = vsel %vm1535_vm3, %v99_v46, 0.0  ;;  %v1296_v55 = vpack.c.bf16 %v351_v53, %v350_v52  ;;  %v121_v56 = vsel %vm118_vm4, %v114_v48, %v115_v49  ;;  %v30_v57 = vadd.s32 8, %v1496_v16 }
  0x1d   :  { %v116_v60 = vrot.slane %v1515_v26, 1  ;;  %v1300_v61 = vpack.c.bf16 %v353_v59, %v352_v58  ;;  %v32_v63 = vadd.s32 24, %v1496_v16  ;;  %v117_v0 = vrot.slane %v1501_v17, 1  ;;  %v580_v58 = vld [vmem:[#allocation2 + $0x148] sm:$0xff]  ;;  %v563_v59 = vld [vmem:[#allocation2 + $0xc0] sm:$0xff] }
  0x1e   :  { %1267 = vmatpush3.bf16.msra.mxu0 %v1264_v9  ;;  %v44_v62 = vand.u32 15, %v30_v57  ;;  %v579_v57 = vld [vmem:[#allocation2 + $0x140] sm:$0xff] }
  0x1f   :  { %1269 = vmatprep.subr.bf16.mxu0 %v1268_v13  ;;  %v120_v2 = vsel %vm118_vm4, %v115_v49, %v116_v60  ;;  %v58_v3 = vand.u32 15, %v32_v63  ;;  %v119_v5 = vsel %vm118_vm4, %v116_v60, %v117_v0  ;;  %v122_v7 = vsel %vm118_vm4, %v117_v0, %v114_v48 }
  0x20   :  { %vm1560_vm5 = vcmp.ne.s32.totalorder %v44_v62, 15  ;;  %v1304_v60 = vpack.c.bf16 %v580_v58, %v579_v57 }
  0x21   :  { %v132_v4 = vsel %vm1560_vm5, %v120_v2, 0.0  ;;  %vm1570_vm6 = vcmp.ne.s32.totalorder %v58_v3, 15  ;;  %v581_v2 = vld [vmem:[#allocation2 + $0x150] sm:$0xff]  ;;  %v582_v3 = vld [vmem:[#allocation2 + $0x158] sm:$0xff] }
  0x22   :  { %1271 = vmatpush3.bf16.msra.mxu0 %v1268_v13  ;;  %v134_v8 = vsel %vm1570_vm6, %v122_v7, 0.0  ;;  %v566_v7 = vld [vmem:[#allocation2 + $0xd8] sm:$0xff] }
  0x23   :  { %1273 = vmatprep.subr.bf16.mxu0 %v1272_v18 }
  0x25   :  { %1093 = vmatmul.mubr.msk.f32.vlgmr.msra.gmra.mrb[0].mxu0 %vm151_vm0, %v1510_v24 }
  0x26   :  { %1275 = vmatpush3.bf16.msra.mxu0 %v1272_v18  ;;  %1095 = vmatprep.mubr.msk.f32.mxu0 %vm151_vm0, %v1515_v26 }
  0x27   :  { %1277 = vmatprep.subr.bf16.mxu0 %v1276_v25 }
  0x29   :  { %1096 = vmatmul.mubr.msk.f32.gmra.mrb[2].mxu0 %vm151_vm0, %v1501_v17 }
  0x2a   :  { %1279 = vmatpush3.bf16.msra.mxu0 %v1276_v25  ;;  %1114 = vmatprep.mubr.msk.f32.mxu0 %vm151_vm0, %v110_v32  ;;  %v1586_v32 = vsub.s32 0, %v1496_v16 }
  0x2b   :  { %1281 = vmatprep.subr.bf16.mxu0 %v1280_v31 }
  0x2e   :  { %1283 = vmatpush3.bf16.msra.mxu0 %v1280_v31 }
  0x2f   :  { %1285 = vmatprep.subr.bf16.mxu0 %v1284_v36 }
  0x32   :  { %1287 = vmatpush3.bf16.msra.mxu0 %v1284_v36 }
  0x33   :  { %1289 = vmatprep.subr.bf16.mxu0 %v1288_v42 }
  0x35   :  { %1115 = vmatmul.mubr.msk.f32.vlgmr.msra.gmra.mrb[0].mxu0 %vm151_vm0, %v100_v47 }
  0x36   :  { %1291 = vmatpush3.bf16.msra.mxu0 %v1288_v42  ;;  %1117 = vmatprep.mubr.msk.f32.mxu0 %vm151_vm0, %v112_v51 }
  0x37   :  { %1293 = vmatprep.subr.bf16.mxu0 %v1292_v50 }
  0x39   :  { %1118 = vmatmul.mubr.msk.f32.gmra.mrb[2].mxu0 %vm151_vm0, %v98_v54 }
  0x3a   :  { %1295 = vmatpush3.bf16.msra.mxu0 %v1292_v50  ;;  %1136 = vmatprep.mubr.msk.f32.mxu0 %vm151_vm0, %v121_v56 }
  0x3b   :  { %1297 = vmatprep.subr.bf16.mxu0 %v1296_v55 }
  0x3e   :  { %1299 = vmatpush3.bf16.msra.mxu0 %v1296_v55 }
  0x3f   :  { %1301 = vmatprep.subr.bf16.mxu0 %v1300_v61 }
  0x42   :  { %1303 = vmatpush3.bf16.msra.mxu0 %v1300_v61  ;;  %v564_v61 = vld [vmem:[#allocation2 + $0xc8] sm:$0xff] }
  0x43   :  { %v1336_v62 = vpack.c.bf16 %v564_v61, %v563_v59  ;;  %1305 = vmatprep.subr.bf16.mxu0 %v1304_v60 }
  0x45   :  { %1137 = vmatmul.mubr.msk.f32.vlgmr.msra.gmra.mrb[0].mxu0 %vm151_vm0, %v132_v4  ;;  %1337 = vmatprep.subr.bf16.mxu1 %v1336_v62  ;;  %v1308_v4 = vpack.c.bf16 %v582_v3, %v581_v2  ;;  %v974_v3 = vld [vmem:[%s1694_s2 + $0x1] ss:$0 sm:$0xff] }
  0x46   :  { %1139 = vmatprep.mubr.msk.f32.mxu0 %vm151_vm0, %v119_v5  ;;  %1307 = vmatpush3.bf16.msra.mxu0 %v1304_v60  ;;  %v565_v5 = vld [vmem:[#allocation2 + $0xd0] sm:$0xff] }
  0x47   :  { %1339 = vmatpush3.bf16.msra.mxu1 %v1336_v62  ;;  %1309 = vmatprep.subr.bf16.mxu0 %v1308_v4  ;;  %v455_v62 = vld [vmem:[%s1694_s2] sm:$0x1] }
  0x49   :  { %1140 = vmatmul.mubr.msk.f32.gmra.mrb[2].mxu0 %vm151_vm0, %v134_v8  ;;  %v1340_v8 = vpack.c.bf16 %v566_v7, %v565_v5 }
  0x4a   :  { %1311 = vmatpush3.bf16.msra.mxu0 %v1308_v4 }
  0x4b   :  { %1341 = vmatprep.subr.bf16.mxu1 %v1340_v8 }
  0x4c   :  { %1343 = vmatpush3.bf16.msra.mxu1 %v1340_v8 }
 0x118   :  { %v1138_v9 = vpop.f32.mrb[0].mxu0 }
 0x119   :  { %v432_v10 = vpop.f32.mrb[1].mxu0 }
 0x11a   :  { %v457_v11 = vadd.f32 %v1138_v9, %v432_v10 }
 0x11c   :  { %v1141_v12 = vpop.f32.mrb[2].mxu0 }
 0x11d   :  { %v442_v13 = vpop.f32.mrb[3].mxu0 }
 0x11e   :  { %v458_v14 = vadd.f32 %v457_v11, %v442_v13 }
 0x120   :  { %v459_v15 = vadd.f32 %v1141_v12, %v458_v14 }
 0x122   :  { %v460_v17 = vrot.slane %v459_v15, 4 }
 0x124   :  { %v461_v18 = vadd.f32 %v460_v17, %v459_v15  ;;  %v585_v15 = vld [vmem:[#allocation2 + $0x170] sm:$0xff]  ;;  %v586_v17 = vld [vmem:[#allocation2 + $0x178] sm:$0xff] }
 0x126   :  { %v462_v19 = vrot.slane %v461_v18, 2 }
 0x128   :  { %v463_v20 = vadd.f32 %v462_v19, %v461_v18  ;;  %v1316_v18 = vpack.c.bf16 %v586_v17, %v585_v15  ;;  %v569_v19 = vld [vmem:[#allocation2 + $0xf0] sm:$0xff] }
 0x12a   :  { %v464_v21 = vrot.slane %v463_v20, 1 }
 0x12c   :  { %v465_v22 = vadd.f32 %v464_v21, %v463_v20  ;;  %v570_v20 = vld [vmem:[#allocation2 + $0xf8] sm:$0xff] }
 0x12d   :  { %v1348_v21 = vpack.c.bf16 %v570_v20, %v569_v19 }
 0x12e   :  { %v467_v23 = vmul.f32 0.03125, %v465_v22  ;;  %v587_v22 = vld [vmem:[#allocation2 + $0x180] sm:$0xff] }
 0x130   :  { %468 = vrot.lane.b32.xlu0 %v467_v23, %s1452_s23 }
 0x1a2   :  { %v469_v24 = vpop.permute.xlu0 %468 }
 0x1a3   :  { %v470_v25 = vadd.f32 %v469_v24, %v467_v23  ;;  %v588_v23 = vld [vmem:[#allocation2 + $0x188] sm:$0xff] }
 0x1a5   :  { %471 = vrot.lane.b32.xlu0 %v470_v25, %s1453_s0 }
 0x217   :  { %v472_v26 = vpop.permute.xlu0 %471 }
 0x218   :  { %v473_v27 = vadd.f32 %v472_v26, %v470_v25  ;;  %v1320_v25 = vpack.c.bf16 %v588_v23, %v587_v22  ;;  %v769_v23 = vld [vmem:[#allocation2 + $0x1e0] sm:$0xff] }
 0x21a   :  { %474 = vrot.lane.b32.xlu1 %v473_v27, %s1454_s6 }
 0x28c   :  { %v475_v28 = vpop.permute.xlu1 %474 }
 0x28d   :  { %v476_v30 = vadd.f32 %v475_v28, %v473_v27  ;;  %v571_v27 = vld [vmem:[#allocation2 + $0x100] sm:$0xff]  ;;  %v572_v28 = vld [vmem:[#allocation2 + $0x108] sm:$0xff] }
 0x28f   :  { %477 = vrot.lane.b32.xlu1 %v476_v30, %s1455_s7 }
 0x301   :  { %v478_v31 = vpop.permute.xlu1 %477 }
 0x302   :  { %v479_v33 = vadd.f32 %v478_v31, %v476_v30  ;;  %v1352_v30 = vpack.c.bf16 %v572_v28, %v571_v27  ;;  %v589_v31 = vld [vmem:[#allocation2 + $0x190] sm:$0xff] }
 0x304   :  { %v480_v34 = vmul.f32 0.0625, %v479_v33  ;;  %v590_v33 = vld [vmem:[#allocation2 + $0x198] sm:$0xff] }
 0x306   :  { %v484_v35 = vrot.slane %v480_v34, %v1586_v32  ;;  %v1324_v34 = vpack.c.bf16 %v590_v33, %v589_v31  ;;  %v772_v31 = vld [vmem:[#allocation2 + $0x1f8] sm:$0xff] }
 0x308   :  { %v1589_v36 = vsub.f32 %v432_v10, %v484_v35  ;;  %v1591_v37 = vsub.f32 %v1138_v9, %v484_v35  ;;  %v1593_v38 = vsub.f32 %v442_v13, %v484_v35  ;;  %v1595_v39 = vsub.f32 %v1141_v12, %v484_v35  ;;  %v583_v9 = vld [vmem:[#allocation2 + $0x160] sm:$0xff]  ;;  %v584_v10 = vld [vmem:[#allocation2 + $0x168] sm:$0xff]  ;;  %v573_v35 = vld [vmem:[#allocation2 + $0x110] sm:$0xff] }
 0x309   :  { %v1312_v11 = vpack.c.bf16 %v584_v10, %v583_v9  ;;  %v567_v12 = vld [vmem:[#allocation2 + $0xe0] sm:$0xff]  ;;  %v568_v13 = vld [vmem:[#allocation2 + $0xe8] sm:$0xff] }
 0x30a   :  { %v489_v40 = vmul.f32 %v1589_v36, %v1589_v36  ;;  %v490_v41 = vmul.f32 %v1591_v37, %v1591_v37  ;;  %v491_v42 = vmul.f32 %v1593_v38, %v1593_v38  ;;  %v492_v44 = vmul.f32 %v1595_v39, %v1595_v39 }
 0x30b   :  { %1313 = vmatprep.subr.bf16.mxu0 %v1312_v11  ;;  %v1344_v14 = vpack.c.bf16 %v568_v13, %v567_v12 }
 0x30c   :  { %v493_v43 = vadd.f32 %v490_v41, %v489_v40  ;;  %1315 = vmatpush3.bf16.msra.mxu0 %v1312_v11  ;;  %v574_v40 = vld [vmem:[#allocation2 + $0x118] sm:$0xff] }
 0x30d   :  { %1345 = vmatprep.subr.bf16.mxu1 %v1344_v14  ;;  %1317 = vmatprep.subr.bf16.mxu0 %v1316_v18  ;;  %v1356_v41 = vpack.c.bf16 %v574_v40, %v573_v35  ;;  %v773_v35 = vld [vmem:[#allocation2 + $0x200] sm:$0xff]  ;;  %v774_v40 = vld [vmem:[#allocation2 + $0x208] sm:$0xff] }
 0x30e   :  { %v494_v46 = vadd.f32 %v493_v43, %v491_v42  ;;  %1347 = vmatpush3.bf16.msra.mxu1 %v1344_v14  ;;  %v591_v42 = vld [vmem:[#allocation2 + $0x1a0] sm:$0xff]  ;;  %v592_v43 = vld [vmem:[#allocation2 + $0x1a8] sm:$0xff]  ;;  %v1384_v45 = vpack.c.bf16 %v774_v40, %v773_v35 }
 0x30f   :  { %1349 = vmatprep.subr.bf16.mxu1 %v1348_v21 }
 0x310   :  { %v495_v47 = vadd.f32 %v494_v46, %v492_v44  ;;  %1319 = vmatpush3.bf16.msra.mxu0 %v1316_v18  ;;  %v575_v44 = vld [vmem:[#allocation2 + $0x120] sm:$0xff]  ;;  %v1328_v46 = vpack.c.bf16 %v592_v43, %v591_v42  ;;  %v767_v18 = vld [vmem:[#allocation2 + $0x1d0] sm:$0xff]  ;;  %v776_v42 = vld [vmem:[#allocation2 + $0x218] sm:$0xff] }
 0x311   :  { %1321 = vmatprep.subr.bf16.mxu0 %v1320_v25 }
 0x312   :  { %v496_v48 = vrot.slane %v495_v47, 4  ;;  %1351 = vmatpush3.bf16.msra.mxu1 %v1348_v21 }
 0x313   :  { %1353 = vmatprep.subr.bf16.mxu1 %v1352_v30 }
 0x314   :  { %v497_v49 = vadd.f32 %v496_v48, %v495_v47  ;;  %1323 = vmatpush3.bf16.msra.mxu0 %v1320_v25  ;;  %v576_v47 = vld [vmem:[#allocation2 + $0x128] sm:$0xff]  ;;  %v593_v48 = vld [vmem:[#allocation2 + $0x1b0] sm:$0xff] }
 0x315   :  { %1325 = vmatprep.subr.bf16.mxu0 %v1324_v34 }
 0x316   :  { %v498_v50 = vrot.slane %v497_v49, 2  ;;  %1355 = vmatpush3.bf16.msra.mxu1 %v1352_v30  ;;  %v771_v30 = vld [vmem:[#allocation2 + $0x1f0] sm:$0xff] }
 0x317   :  { %1357 = vmatprep.subr.bf16.mxu1 %v1356_v41 }
 0x318   :  { %v499_v51 = vadd.f32 %v498_v50, %v497_v49  ;;  %1327 = vmatpush3.bf16.msra.mxu0 %v1324_v34  ;;  %v594_v49 = vld [vmem:[#allocation2 + $0x1b8] sm:$0xff]  ;;  %v1360_v50 = vpack.c.bf16 %v576_v47, %v575_v44  ;;  %v1380_v34 = vpack.c.bf16 %v772_v31, %v771_v30  ;;  %v777_v44 = vld [vmem:[#allocation2 + $0x220] sm:$0xff] }
 0x319   :  { %1329 = vmatprep.subr.bf16.mxu0 %v1328_v46 }
 0x31a   :  { %v500_v52 = vrot.slane %v499_v51, 1  ;;  %1359 = vmatpush3.bf16.msra.mxu1 %v1356_v41  ;;  %v775_v41 = vld [vmem:[#allocation2 + $0x210] sm:$0xff] }
 0x31b   :  { %1361 = vmatprep.subr.bf16.mxu1 %v1360_v50  ;;  %v1388_v43 = vpack.c.bf16 %v776_v42, %v775_v41 }
 0x31c   :  { %v501_v53 = vadd.f32 %v500_v52, %v499_v51  ;;  %v1332_v51 = vpack.c.bf16 %v594_v49, %v593_v48  ;;  %v577_v52 = vld [vmem:[#allocation2 + $0x130] sm:$0xff]  ;;  %1331 = vmatpush3.bf16.msra.mxu0 %v1328_v46  ;;  %v778_v46 = vld [vmem:[#allocation2 + $0x228] sm:$0xff]  ;;  %v780_v49 = vld [vmem:[#allocation2 + $0x238] sm:$0xff] }
 0x31d   :  { %v1392_v47 = vpack.c.bf16 %v778_v46, %v777_v44  ;;  %v779_v48 = vld [vmem:[#allocation2 + $0x230] sm:$0xff] }
 0x31e   :  { %v502_v54 = vmul.f32 0.03125, %v501_v53  ;;  %v578_v53 = vld [vmem:[#allocation2 + $0x138] sm:$0xff]  ;;  %1333 = vmatprep.subr.bf16.mxu0 %v1332_v51  ;;  %1363 = vmatpush3.bf16.msra.mxu1 %v1360_v50  ;;  %v1396_v50 = vpack.c.bf16 %v780_v49, %v779_v48 }
 0x320   :  { %503 = vrot.lane.b32.xlu0 %v502_v54, %s1452_s23  ;;  %1335 = vmatpush3.bf16.msra.mxu0 %v1332_v51 }
 0x392   :  { %v504_v55 = vpop.permute.xlu0 %503 }
 0x393   :  { %v505_v56 = vadd.f32 %v504_v55, %v502_v54  ;;  %v1364_v54 = vpack.c.bf16 %v578_v53, %v577_v52  ;;  %v765_v55 = vld [vmem:[#allocation2 + $0x1c0] sm:$0xff] }
 0x395   :  { %506 = vrot.lane.b32.xlu1 %v505_v56, %s1453_s0  ;;  %1365 = vmatprep.subr.bf16.mxu1 %v1364_v54 }
 0x396   :  { %1367 = vmatpush3.bf16.msra.mxu1 %v1364_v54 }
 0x407   :  { %v507_v63 = vpop.permute.xlu1 %506 }
 0x408   :  { %v508_v0 = vadd.f32 %v507_v63, %v505_v56  ;;  %v766_v56 = vld [vmem:[#allocation2 + $0x1c8] sm:$0xff] }
 0x409   :  { %v1368_v57 = vpack.c.bf16 %v766_v56, %v765_v55 }
 0x40a   :  { %509 = vrot.lane.b32.xlu0 %v508_v0, %s1454_s6 }
 0x40b   :  { %1369 = vmatprep.subr.bf16.mxu1 %v1368_v57 }
 0x47c   :  { %v510_v24 = vpop.permute.xlu0 %509 }
 0x47d   :  { %v511_v26 = vadd.f32 %v510_v24, %v508_v0  ;;  %v770_v24 = vld [vmem:[#allocation2 + $0x1e8] sm:$0xff] }
 0x47e   :  { %v1376_v28 = vpack.c.bf16 %v770_v24, %v769_v23 }
 0x47f   :  { %512 = vrot.lane.b32.xlu1 %v511_v26, %s1455_s7 }
 0x4f1   :  { %v513_v58 = vpop.permute.xlu1 %512 }
 0x4f2   :  { %v514_v59 = vadd.f32 %v513_v58, %v511_v26 }
 0x4f4   :  { %v515_v60 = vmul.f32 0.0625, %v514_v59 }
 0x4f6   :  { %v516_v61 = vadd.f32 1e-05, %v515_v60 }
 0x4f8   :  { %1422 = vrsqrt.f32 %v516_v61 }
 0x502   :  { %v1423_v63 = vpop.eup %1422 }
 0x503   :  { %v518_v0 = vmul.f32 %v1423_v63, %v455_v62 }
 0x505   :  { %v522_v2 = vrot.slane %v518_v0, %v1586_v32 }
 0x507   :  { %v523_v4 = vmul.f32 %v522_v2, %v1589_v36  ;;  %v524_v5 = vmul.f32 %v522_v2, %v1591_v37  ;;  %v525_v7 = vmul.f32 %v522_v2, %v1593_v38  ;;  %v526_v8 = vmul.f32 %v522_v2, %v1595_v39  ;;  %v768_v36 = vld [vmem:[#allocation2 + $0x1d8] sm:$0xff] }
 0x508   :  { %v1372_v22 = vpack.c.bf16 %v768_v36, %v767_v18 }
 0x509   :  { %v531_v9 = vadd.f32 %v974_v3, %v523_v4  ;;  %v532_v10 = vadd.f32 %v974_v3, %v524_v5  ;;  %v533_v11 = vadd.f32 %v974_v3, %v525_v7  ;;  %v534_v12 = vadd.f32 %v974_v3, %v526_v8 }
 0x50b   :  { %v1620_v13 = vmax.f32 %v531_v9, 0.0  ;;  %v1622_v14 = vmax.f32 %v532_v10, 0.0  ;;  %v1624_v15 = vmax.f32 %v533_v11, 0.0  ;;  %v1626_v17 = vmax.f32 %v534_v12, 0.0 }
 0x50d   :  { %1174 = vmatprep.mubr.f32.mxu0 %v1620_v13  ;;  %v539_v37 = vrot.slane %v1620_v13, 7  ;;  %v542_v38 = vrot.slane %v1626_v17, 7  ;;  %v540_v39 = vrot.slane %v1622_v14, 7  ;;  %v541_v19 = vrot.slane %v1624_v15, 7 }
 0x50e   :  { %1175 = vmatmul.mubr.f32.vlgmr.msra.gmra.mrb[4].mxu0 %v1622_v14  ;;  %v551_v25 = vrot.slane %v1620_v13, 1  ;;  %v552_v26 = vrot.slane %v1622_v14, 1  ;;  %v553_v51 = vrot.slane %v1624_v15, 1  ;;  %v554_v52 = vrot.slane %v1626_v17, 1 }
 0x50f   :  { %1177 = vmatprep.mubr.f32.mxu0 %v1624_v15  ;;  %v546_v20 = vsel %vm97_vm1, %v542_v38, %v539_v37  ;;  %v545_v21 = vsel %vm97_vm1, %v539_v37, %v540_v39  ;;  %v544_v27 = vsel %vm97_vm1, %v540_v39, %v541_v19  ;;  %v543_v29 = vsel %vm97_vm1, %v541_v19, %v542_v38 }
 0x510   :  { %1212 = vmatprep.mubr.msk.f32.mxu1 %vm1517_vm2, %v546_v20  ;;  %v557_v33 = vsel %vm118_vm4, %v551_v25, %v552_v26  ;;  %v556_v53 = vsel %vm118_vm4, %v552_v26, %v553_v51  ;;  %v555_v54 = vsel %vm118_vm4, %v553_v51, %v554_v52  ;;  %v558_v55 = vsel %vm118_vm4, %v554_v52, %v551_v25 }
 0x511   :  { %1213 = vmatmul.mubr.f32.vlgmr.msra.gmra.mrb[0].mxu1 %v545_v21 }
 0x512   :  { %1371 = vmatpush3.bf16.msra.mxu1 %v1368_v57  ;;  %1178 = vmatmul.mubr.f32.gmra.mrb[6].mxu0 %v1626_v17 }
 0x513   :  { %1215 = vmatprep.mubr.msk.f32.mxu1 %vm1535_vm3, %v544_v27  ;;  %1373 = vmatprep.subr.bf16.mxu1 %v1372_v22 }
 0x515   :  { %1216 = vmatmul.mubr.f32.gmra.mrb[2].mxu1 %v543_v29 }
 0x516   :  { %1375 = vmatpush3.bf16.msra.mxu1 %v1372_v22  ;;  %1250 = vmatprep.mubr.f32.mxu1 %v557_v33 }
 0x517   :  { %1377 = vmatprep.subr.bf16.mxu1 %v1376_v28 }
 0x51a   :  { %1379 = vmatpush3.bf16.msra.mxu1 %v1376_v28 }
 0x51b   :  { %1381 = vmatprep.subr.bf16.mxu1 %v1380_v34 }
 0x51e   :  { %1383 = vmatpush3.bf16.msra.mxu1 %v1380_v34 }
 0x51f   :  { %1385 = vmatprep.subr.bf16.mxu1 %v1384_v45 }
 0x522   :  { %1387 = vmatpush3.bf16.msra.mxu1 %v1384_v45 }
 0x523   :  { %1389 = vmatprep.subr.bf16.mxu1 %v1388_v43 }
 0x526   :  { %1391 = vmatpush3.bf16.msra.mxu1 %v1388_v43 }
 0x527   :  { %1393 = vmatprep.subr.bf16.mxu1 %v1392_v47 }
 0x52a   :  { %1395 = vmatpush3.bf16.msra.mxu1 %v1392_v47 }
 0x52b   :  { %1397 = vmatprep.subr.bf16.mxu1 %v1396_v50 }
 0x52e   :  { %1399 = vmatpush3.bf16.msra.mxu1 %v1396_v50 }
 0x531   :  { %1251 = vmatmul.mubr.msk.f32.vlgmr.msra.gmra.mrb[0].mxu1 %vm1560_vm5, %v556_v53  ;;  %v870_v53 = vld [vmem:[%s1694_s2 + $0x2] sm:$0x1] }
 0x532   :  { %1253 = vmatprep.mubr.f32.mxu1 %v555_v54 }
 0x535   :  { %1254 = vmatmul.mubr.msk.f32.gmra.mrb[2].mxu1 %vm1570_vm6, %v558_v55 }
 0x5e1   :  { %v1176_v56 = vpop.f32.mrb[4].mxu0 }
 0x5e2   :  { %v661_v57 = vpop.f32.mrb[5].mxu0 }
 0x5e5   :  { %v1179_v58 = vpop.f32.mrb[6].mxu0 }
 0x5e6   :  { %v671_v59 = vpop.f32.mrb[7].mxu0 }
 0x604   :  { %v1252_v60 = vpop.f32.mrb[0].mxu1 }
 0x605   :  { %v1400_v61 = vadd.f32 %v1252_v60, %v1176_v56  ;;  %v847_v62 = vpop.f32.mrb[1].mxu1 }
 0x606   :  { %v1401_v63 = vadd.f32 %v847_v62, %v661_v57  ;;  %v979_v57 = vld [vmem:[%s1694_s2 + $0x3] ss:$0 sm:$0xff] }
 0x608   :  { %v1255_v1 = vpop.f32.mrb[2].mxu1  ;;  %v872_v3 = vadd.f32 %v1401_v63, %v1400_v61 }
 0x609   :  { %v1402_v0 = vadd.f32 %v1255_v1, %v1179_v58  ;;  %v857_v2 = vpop.f32.mrb[3].mxu1 }
 0x60a   :  { %v1403_v4 = vadd.f32 %v857_v2, %v671_v59 }
 0x60c   :  { %v873_v5 = vadd.f32 %v1403_v4, %v872_v3 }
 0x60e   :  { %v874_v7 = vadd.f32 %v1402_v0, %v873_v5 }
 0x610   :  { %v875_v16 = vrot.slane %v874_v7, 4 }
 0x612   :  { %v876_v8 = vadd.f32 %v875_v16, %v874_v7 }
 0x614   :  { %v877_v9 = vrot.slane %v876_v8, 2 }
 0x616   :  { %v878_v6 = vadd.f32 %v877_v9, %v876_v8 }
 0x618   :  { %v879_v10 = vrot.slane %v878_v6, 1 }
 0x61a   :  { %v880_v11 = vadd.f32 %v879_v10, %v878_v6 }
 0x61c   :  { %v881_v12 = vmul.f32 0.03125, %v880_v11 }
 0x61e   :  { %882 = vrot.lane.b32.xlu0 %v881_v12, %s1452_s23 }
 0x690   :  { %v883_v13 = vpop.permute.xlu0 %882 }
 0x691   :  { %v884_v14 = vadd.f32 %v883_v13, %v881_v12 }
 0x693   :  { %885 = vrot.lane.b32.xlu1 %v884_v14, %s1453_s0 }
 0x705   :  { %v886_v15 = vpop.permute.xlu1 %885 }
 0x706   :  { %v887_v17 = vadd.f32 %v886_v15, %v884_v14 }
 0x708   :  { %888 = vrot.lane.b32.xlu0 %v887_v17, %s1454_s6 }
 0x77a   :  { %v889_v18 = vpop.permute.xlu0 %888 }
 0x77b   :  { %v890_v36 = vadd.f32 %v889_v18, %v887_v17 }
 0x77d   :  { %891 = vrot.lane.b32.xlu1 %v890_v36, %s1455_s7 }
 0x7ef   :  { %v892_v37 = vpop.permute.xlu1 %891 }
 0x7f0   :  { %v893_v38 = vadd.f32 %v892_v37, %v890_v36 }
 0x7f2   :  { %v894_v39 = vmul.f32 0.0625, %v893_v38 }
 0x7f4   :  { %v898_v19 = vrot.slane %v894_v39, %v1586_v32 }
 0x7f6   :  { %v899_v20 = vsub.f32 %v1401_v63, %v898_v19  ;;  %v900_v21 = vsub.f32 %v1400_v61, %v898_v19  ;;  %v901_v22 = vsub.f32 %v1403_v4, %v898_v19  ;;  %v902_v23 = vsub.f32 %v1402_v0, %v898_v19 }
 0x7f8   :  { %v903_v24 = vmul.f32 %v899_v20, %v899_v20  ;;  %v904_v25 = vmul.f32 %v900_v21, %v900_v21  ;;  %v905_v26 = vmul.f32 %v901_v22, %v901_v22  ;;  %v906_v28 = vmul.f32 %v902_v23, %v902_v23 }
 0x7fa   :  { %v907_v27 = vadd.f32 %v904_v25, %v903_v24 }
 0x7fc   :  { %v908_v29 = vadd.f32 %v907_v27, %v905_v26 }
 0x7fe   :  { %v909_v30 = vadd.f32 %v908_v29, %v906_v28 }
 0x800   :  { %v910_v31 = vrot.slane %v909_v30, 4 }
 0x802   :  { %v911_v33 = vadd.f32 %v910_v31, %v909_v30 }
 0x804   :  { %v912_v34 = vrot.slane %v911_v33, 2 }
 0x806   :  { %v913_v35 = vadd.f32 %v912_v34, %v911_v33 }
 0x808   :  { %v914_v40 = vrot.slane %v913_v35, 1 }
 0x80a   :  { %v915_v45 = vadd.f32 %v914_v40, %v913_v35 }
 0x80c   :  { %v916_v41 = vmul.f32 0.03125, %v915_v45 }
 0x80e   :  { %917 = vrot.lane.b32.xlu0 %v916_v41, %s1452_s23 }
 0x880   :  { %v918_v42 = vpop.permute.xlu0 %917 }
 0x881   :  { %v919_v43 = vadd.f32 %v918_v42, %v916_v41 }
 0x883   :  { %920 = vrot.lane.b32.xlu1 %v919_v43, %s1453_s0 }
 0x8f5   :  { %v921_v44 = vpop.permute.xlu1 %920 }
 0x8f6   :  { %v922_v46 = vadd.f32 %v921_v44, %v919_v43 }
 0x8f8   :  { %923 = vrot.lane.b32.xlu0 %v922_v46, %s1454_s6 }
 0x96a   :  { %v924_v47 = vpop.permute.xlu0 %923 }
 0x96b   :  { %v925_v48 = vadd.f32 %v924_v47, %v922_v46 }
 0x96d   :  { %926 = vrot.lane.b32.xlu1 %v925_v48, %s1455_s7 }
 0x9df   :  { %v927_v49 = vpop.permute.xlu1 %926 }
 0x9e0   :  { %v928_v50 = vadd.f32 %v927_v49, %v925_v48 }
 0x9e2   :  { %v929_v51 = vmul.f32 0.0625, %v928_v50 }
 0x9e4   :  { %v930_v52 = vadd.f32 1e-05, %v929_v51 }
 0x9e6   :  { %1424 = vrsqrt.f32 %v930_v52 }
 0x9f0   :  { %v1425_v54 = vpop.eup %1424 }
 0x9f1   :  { %v932_v55 = vmul.f32 %v1425_v54, %v870_v53 }
 0x9f3   :  { %v936_v56 = vrot.slane %v932_v55, %v1586_v32 }
 0x9f5   :  { %v937_v58 = vmul.f32 %v936_v56, %v899_v20  ;;  %v938_v59 = vmul.f32 %v936_v56, %v900_v21  ;;  %v939_v60 = vmul.f32 %v936_v56, %v901_v22  ;;  %v940_v61 = vmul.f32 %v936_v56, %v902_v23 }
 0x9f7   :  { %v945_v62 = vadd.f32 %v979_v57, %v937_v58  ;;  %v946_v63 = vadd.f32 %v979_v57, %v938_v59  ;;  %v947_v1 = vadd.f32 %v979_v57, %v939_v60  ;;  %v948_v0 = vadd.f32 %v979_v57, %v940_v61 }
 0x9f9   :  { %v949_v2 = vmax.f32 %v945_v62, 0.0  ;;  %v950_v3 = vmax.f32 %v946_v63, 0.0  ;;  %v951_v4 = vmax.f32 %v947_v1, 0.0  ;;  %v952_v5 = vmax.f32 %v948_v0, 0.0 }
 0x9fb   :  { %953 = vst [vmem:[%s1695_s3] sm:$0xff] %v949_v2  ;;  %954 = vst [vmem:[%s1695_s3 + $0x8] sm:$0xff] %v950_v3 }
 0x9fc   :  { %955 = vst [vmem:[%s1695_s3 + $0x10] sm:$0xff] %v951_v4  ;;  %956 = vst [vmem:[%s1695_s3 + $0x18] sm:$0xff] %v952_v5 }
 0x9fd   :  { %961 = vsyncpa [#allocation3], 1 }

</bundles_post_ra>
